<compile_context>
chip_gen: v7x
topology: tpu7x:2x2x1
jax: 0.10.0
libtpu: 0.0.40
codegen_flags: <defaults>
</compile_context>

<pallas_src>
import functools
import math

import jax
import jax.numpy as jnp
from jax import lax
from jax.experimental import pallas as pl
from jax.experimental.pallas import tpu as pltpu


def _round_up(x, m):
    return ((x + m - 1) // m) * m


def _adj_kernel(xq_ref, xk_ref, wq_ref, bq_ref, wk_ref, bk_ref,
                aff_ref, pen_ref, *, scale):
    xq = xq_ref[...]                                   # (tm, D)   query row tile
    xk = xk_ref[...]                                   # (Nk, D)   all (padded) key rows
    q = jnp.dot(xq, wq_ref[...], preferred_element_type=jnp.float32) + bq_ref[...]
    k = jnp.dot(xk, wk_ref[...], preferred_element_type=jnp.float32) + bk_ref[...]
    # scores = q @ k^T (contract the feature dim), scale by 1/sqrt(d_model), tanh.
    s = lax.dot_general(q, k, (((1,), (1,)), ((), ())),
                        preferred_element_type=jnp.float32)
    s = jnp.tanh(s * scale)
    zero = jnp.zeros_like(s)
    aff_ref[...] = jnp.where(s > 0, s, zero).astype(aff_ref.dtype)
    pen_ref[...] = jnp.where(s < 0, s, zero).astype(pen_ref.dtype)


def get_adj_mx_forward(x, wq, bq, wk, bk, *, threshold=False, row_tile=256):
    """x: [B, N, d_model] -> (affinity, penalty), each [B, N, N]."""
    if threshold:
        # TODO(synk): threshold_top_values_ste_PosNeg (per-row topk-8 + scatter with a
        # straight-through estimator) has no clean Pallas equivalent here.
        raise NotImplementedError("threshold=True path not implemented in Pallas")

    B, N, d_model = x.shape
    scale = 1.0 / math.sqrt(d_model)
    itemsize = jnp.dtype(x.dtype).itemsize

    # ---- TPU-friendly padding -------------------------------------------------
    D_pad = _round_up(d_model, 128)                    # lane-dense contraction dim
    N_lane = _round_up(N, 128)                         # lane-dense score last dim
    n_row = _round_up(N, 8)                            # sublane multiple for q rows
    tm = min(_round_up(row_tile, 8), n_row)            # big row tile for MXU M-util
    N_row = _round_up(n_row, tm)                       # rows covered evenly by grid
    n_row_tiles = N_row // tm
    N_x = max(N_row, N_lane)                           # rows held by the padded x

    xp = jnp.pad(x, ((0, 0), (0, N_x - N), (0, D_pad - d_model)))
    wqp = jnp.pad(wq, ((0, D_pad - d_model), (0, D_pad - d_model)))
    wkp = jnp.pad(wk, ((0, D_pad - d_model), (0, D_pad - d_model)))
    bqp = jnp.pad(bq, ((0, 0), (0, D_pad - d_model)))
    bkp = jnp.pad(bk, ((0, 0), (0, D_pad - d_model)))

    # ---- VMEM budget & cost hints ---------------------------------------------
    blk_bytes = itemsize * (tm * D_pad + N_lane * D_pad
                            + 2 * D_pad * D_pad + 2 * D_pad
                            + 2 * tm * N_lane)
    vmem_limit = int(min(64 * 1024 * 1024, max(16 * 1024 * 1024, 4 * blk_bytes)))

    flops = (2 * B * n_row_tiles * tm * D_pad * D_pad            # q per row tile
             + 2 * B * n_row_tiles * N_lane * D_pad * D_pad      # k (recomputed per tile)
             + 2 * B * N_row * N_lane * D_pad)                   # q @ k^T
    cost = pl.CostEstimate(
        flops=flops,
        transcendentals=B * N_row * N_lane,
        bytes_accessed=(xp.size + wqp.size + wkp.size + bqp.size + bkp.size
                        + 2 * B * N_row * N_lane) * itemsize)

    kernel = functools.partial(_adj_kernel, scale=scale)

    aff, pen = pl.pallas_call(
        kernel,
        out_shape=(jax.ShapeDtypeStruct((B, N_row, N_lane), x.dtype),
                   jax.ShapeDtypeStruct((B, N_row, N_lane), x.dtype)),
        grid=(B, n_row_tiles),
        in_specs=[
            # x for the query side: row-tiled (leading batch dim squeezed away)
            pl.BlockSpec((None, tm, D_pad), lambda b, i: (b, i, 0)),
            # x for the key side: all padded rows, same block every row tile
            pl.BlockSpec((None, N_lane, D_pad), lambda b, i: (b, 0, 0)),
            # weights / biases: whole arrays, constant index_map
            pl.BlockSpec((D_pad, D_pad), lambda b, i: (0, 0)),   # Wq
            pl.BlockSpec((1, D_pad), lambda b, i: (0, 0)),       # bq
            pl.BlockSpec((D_pad, D_pad), lambda b, i: (0, 0)),   # Wk
            pl.BlockSpec((1, D_pad), lambda b, i: (0, 0)),       # bk
        ],
        out_specs=[
            pl.BlockSpec((None, tm, N_lane), lambda b, i: (b, i, 0)),
            pl.BlockSpec((None, tm, N_lane), lambda b, i: (b, i, 0)),
        ],
        compiler_params=pltpu.CompilerParams(
            dimension_semantics=("parallel", "parallel"),
            vmem_limit_bytes=vmem_limit),
        cost_estimate=cost,
    )(xp, xp, wqp, bqp, wkp, bkp)

    return aff[:, :N, :N], pen[:, :N, :N]


def init_params(key, d_model, dtype=jnp.float32):
    """Mimics torch.nn.Linear init (uniform +/- 1/sqrt(fan_in)); weights are [in, out]."""
    kq_w, kq_b, kk_w, kk_b = jax.random.split(key, 4)
    bound = 1.0 / math.sqrt(d_model)
    wq = jax.random.uniform(kq_w, (d_model, d_model), dtype, -bound, bound)
    bq = jax.random.uniform(kq_b, (1, d_model), dtype, -bound, bound)
    wk = jax.random.uniform(kk_w, (d_model, d_model), dtype, -bound, bound)
    bk = jax.random.uniform(kk_b, (1, d_model), dtype, -bound, bound)
    return wq, bq, wk, bk


if __name__ == "__main__":
    key = jax.random.PRNGKey(0)
    kx, kp = jax.random.split(key)

    B, N, d_model = 2, 16, 32
    x = jax.random.normal(kx, (B, N, d_model), dtype=jnp.float32)
    wq, bq, wk, bk = init_params(kp, d_model)

    affinity, penalty = get_adj_mx_forward(x, wq, bq, wk, bk, threshold=False)
    jax.block_until_ready((affinity, penalty))

    # Plain-JAX reference of the same math.
    q_ref = x @ wq + bq
    k_ref = x @ wk + bk
    s_ref = jnp.tanh(jnp.einsum("bnd,bmd->bnm", q_ref, k_ref) / math.sqrt(d_model))
    aff_ref = jnp.where(s_ref > 0, s_ref, 0.0)
    pen_ref = jnp.where(s_ref < 0, s_ref, 0.0)

    assert affinity.shape == (B, N, N) and penalty.shape == (B, N, N)
    assert jnp.allclose(affinity, aff_ref, atol=1e-4, rtol=1e-4)
    assert jnp.allclose(penalty, pen_ref, atol=1e-4, rtol=1e-4)

    print("KERNEL_OK")
</pallas_src>

<mosaic_0001>
module attributes {stable_mosaic.version = 11 : i64} {
  func.func @_adj_kernel(%arg0: i32, %arg1: i32, %arg2: memref<1x16x128xf32, #tpu.memory_space<vmem>>, %arg3: memref<1x128x128xf32, #tpu.memory_space<vmem>>, %arg4: memref<128x128xf32, #tpu.memory_space<vmem>>, %arg5: memref<1x128xf32, #tpu.memory_space<vmem>>, %arg6: memref<128x128xf32, #tpu.memory_space<vmem>>, %arg7: memref<1x128xf32, #tpu.memory_space<vmem>>, %arg8: memref<1x16x128xf32, #tpu.memory_space<vmem>>, %arg9: memref<1x16x128xf32, #tpu.memory_space<vmem>>) attributes {dimension_semantics = [#tpu.dimension_semantics<parallel>, #tpu.dimension_semantics<parallel>], iteration_bounds = array<i64: 2, 1>, scalar_prefetch = 0 : i64, scratch_operands = 0 : i64, tpu.core_type = #tpu.core_type<tc>, window_params = [{transform_indices = @transform_0, window_bounds = array<i64: 1, 16, 128>}, {transform_indices = @transform_1, window_bounds = array<i64: 1, 128, 128>}, {pipeline_mode = #tpu.pipeline_mode<synchronous>, transform_indices = @transform_2, window_bounds = array<i64: 128, 128>}, {pipeline_mode = #tpu.pipeline_mode<synchronous>, transform_indices = @transform_3, window_bounds = array<i64: 1, 128>}, {pipeline_mode = #tpu.pipeline_mode<synchronous>, transform_indices = @transform_4, window_bounds = array<i64: 128, 128>}, {pipeline_mode = #tpu.pipeline_mode<synchronous>, transform_indices = @transform_5, window_bounds = array<i64: 1, 128>}, {transform_indices = @transform_6, window_bounds = array<i64: 1, 16, 128>}, {transform_indices = @transform_7, window_bounds = array<i64: 1, 16, 128>}]} {
    %c0 = arith.constant 0 : index
    %c0_0 = arith.constant 0 : index
    %c0_1 = arith.constant 0 : index
    %0 = vector.load %arg2[%c0, %c0_0, %c0_1] : memref<1x16x128xf32, #tpu.memory_space<vmem>>, vector<1x16x128xf32>
    %1 = vector.shape_cast %0 : vector<1x16x128xf32> to vector<16x128xf32>
    %c0_2 = arith.constant 0 : index
    %c0_3 = arith.constant 0 : index
    %c0_4 = arith.constant 0 : index
    %2 = vector.load %arg3[%c0_2, %c0_3, %c0_4] : memref<1x128x128xf32, #tpu.memory_space<vmem>>, vector<1x128x128xf32>
    %3 = vector.shape_cast %2 : vector<1x128x128xf32> to vector<128x128xf32>
    %c0_5 = arith.constant 0 : index
    %c0_6 = arith.constant 0 : index
    %4 = vector.load %arg4[%c0_5, %c0_6] : memref<128x128xf32, #tpu.memory_space<vmem>>, vector<128x128xf32>
    %cst = arith.constant dense<0.000000e+00> : vector<16x128xf32>
    %5 = tpu.matmul %1, %4, %cst {dimension_numbers = #tpu.dot_dimension_numbers<[1], [0], [0], [1], [0, 0, 1, 1], [], []>} : vector<16x128xf32>, vector<128x128xf32>, vector<16x128xf32> -> vector<16x128xf32>
    %c0_7 = arith.constant 0 : index
    %c0_8 = arith.constant 0 : index
    %6 = vector.load %arg5[%c0_7, %c0_8] : memref<1x128xf32, #tpu.memory_space<vmem>>, vector<1x128xf32>
    %7 = vector.broadcast %6 : vector<1x128xf32> to vector<16x128xf32>
    %8 = arith.addf %5, %7 : vector<16x128xf32>
    %c0_9 = arith.constant 0 : index
    %c0_10 = arith.constant 0 : index
    %9 = vector.load %arg6[%c0_9, %c0_10] : memref<128x128xf32, #tpu.memory_space<vmem>>, vector<128x128xf32>
    %cst_11 = arith.constant dense<0.000000e+00> : vector<128x128xf32>
    %10 = tpu.matmul %3, %9, %cst_11 {dimension_numbers = #tpu.dot_dimension_numbers<[1], [0], [0], [1], [0, 0, 1, 1], [], []>} : vector<128x128xf32>, vector<128x128xf32>, vector<128x128xf32> -> vector<128x128xf32>
    %c0_12 = arith.constant 0 : index
    %c0_13 = arith.constant 0 : index
    %11 = vector.load %arg7[%c0_12, %c0_13] : memref<1x128xf32, #tpu.memory_space<vmem>>, vector<1x128xf32>
    %12 = vector.broadcast %11 : vector<1x128xf32> to vector<128x128xf32>
    %13 = arith.addf %10, %12 : vector<128x128xf32>
    %cst_14 = arith.constant dense<0.000000e+00> : vector<16x128xf32>
    %14 = tpu.matmul %8, %13, %cst_14 {dimension_numbers = #tpu.dot_dimension_numbers<[1], [1], [0], [0], [0, 0, 1, 0], [], []>} : vector<16x128xf32>, vector<128x128xf32>, vector<16x128xf32> -> vector<16x128xf32>
    %cst_15 = arith.constant 0.176776692 : f32
    %15 = vector.broadcast %cst_15 : f32 to vector<16x128xf32>
    %16 = arith.mulf %14, %15 : vector<16x128xf32>
    %17 = math.tanh %16 : vector<16x128xf32>
    %cst_16 = arith.constant 0.000000e+00 : f32
    %18 = vector.broadcast %cst_16 : f32 to vector<16x128xf32>
    %cst_17 = arith.constant 0.000000e+00 : f32
    %19 = vector.broadcast %cst_17 : f32 to vector<16x128xf32>
    %20 = arith.cmpf ogt, %17, %19 : vector<16x128xf32>
    %21 = arith.select %20, %17, %18 : vector<16x128xi1>, vector<16x128xf32>
    %c0_18 = arith.constant 0 : index
    %c0_19 = arith.constant 0 : index
    %c0_20 = arith.constant 0 : index
    %22 = vector.load %arg8[%c0_18, %c0_19, %c0_20] : memref<1x16x128xf32, #tpu.memory_space<vmem>>, vector<1x16x128xf32>
    %23 = vector.shape_cast %22 : vector<1x16x128xf32> to vector<16x128xf32>
    %24 = vector.shape_cast %21 : vector<16x128xf32> to vector<1x16x128xf32>
    tpu.vector_store %arg8[%c0_18, %c0_19, %c0_20], %24 {strides = array<i32>} : memref<1x16x128xf32, #tpu.memory_space<vmem>>, vector<1x16x128xf32>,
    %cst_21 = arith.constant 0.000000e+00 : f32
    %25 = vector.broadcast %cst_21 : f32 to vector<16x128xf32>
    %26 = arith.cmpf olt, %17, %25 : vector<16x128xf32>
    %27 = arith.select %26, %17, %18 : vector<16x128xi1>, vector<16x128xf32>
    %c0_22 = arith.constant 0 : index
    %c0_23 = arith.constant 0 : index
    %c0_24 = arith.constant 0 : index
    %28 = vector.load %arg9[%c0_22, %c0_23, %c0_24] : memref<1x16x128xf32, #tpu.memory_space<vmem>>, vector<1x16x128xf32>
    %29 = vector.shape_cast %28 : vector<1x16x128xf32> to vector<16x128xf32>
    %30 = vector.shape_cast %27 : vector<16x128xf32> to vector<1x16x128xf32>
    tpu.vector_store %arg9[%c0_22, %c0_23, %c0_24], %30 {strides = array<i32>} : memref<1x16x128xf32, #tpu.memory_space<vmem>>, vector<1x16x128xf32>,
    return
  }
  func.func @transform_0(%arg0: i32, %arg1: i32) -> (i32, i32, i32) {
    %c0_i32 = arith.constant 0 : i32
    %c0_i32_0 = arith.constant 0 : i32
    return %arg0, %arg1, %c0_i32 : i32, i32, i32
  }
  func.func @transform_1(%arg0: i32, %arg1: i32) -> (i32, i32, i32) {
    %c0_i32 = arith.constant 0 : i32
    %c0_i32_0 = arith.constant 0 : i32
    %c0_i32_1 = arith.constant 0 : i32
    return %arg0, %c0_i32, %c0_i32_0 : i32, i32, i32
  }
  func.func @transform_2(%arg0: i32, %arg1: i32) -> (i32, i32) {
    %c0_i32 = arith.constant 0 : i32
    %c0_i32_0 = arith.constant 0 : i32
    %c0_i32_1 = arith.constant 0 : i32
    return %c0_i32, %c0_i32_0 : i32, i32
  }
  func.func @transform_3(%arg0: i32, %arg1: i32) -> (i32, i32) {
    %c0_i32 = arith.constant 0 : i32
    %c0_i32_0 = arith.constant 0 : i32
    %c0_i32_1 = arith.constant 0 : i32
    return %c0_i32, %c0_i32_0 : i32, i32
  }
  func.func @transform_4(%arg0: i32, %arg1: i32) -> (i32, i32) {
    %c0_i32 = arith.constant 0 : i32
    %c0_i32_0 = arith.constant 0 : i32
    %c0_i32_1 = arith.constant 0 : i32
    return %c0_i32, %c0_i32_0 : i32, i32
  }
  func.func @transform_5(%arg0: i32, %arg1: i32) -> (i32, i32) {
    %c0_i32 = arith.constant 0 : i32
    %c0_i32_0 = arith.constant 0 : i32
    %c0_i32_1 = arith.constant 0 : i32
    return %c0_i32, %c0_i32_0 : i32, i32
  }
  func.func @transform_6(%arg0: i32, %arg1: i32) -> (i32, i32, i32) {
    %c0_i32 = arith.constant 0 : i32
    %c0_i32_0 = arith.constant 0 : i32
    return %arg0, %arg1, %c0_i32 : i32, i32, i32
  }
  func.func @transform_7(%arg0: i32, %arg1: i32) -> (i32, i32, i32) {
    %c0_i32 = arith.constant 0 : i32
    %c0_i32_0 = arith.constant 0 : i32
    return %arg0, %arg1, %c0_i32 : i32, i32, i32
  }
}

</mosaic_0001>

<bundles_post_ra>
// kernel: tpu_custom_call.1
= control target key start
LH: loop header
LB: loop body
LE: loop exit
PB: predicated region body
PF: predicated region fallthrough
CT: control target
= control target key end

     0   :  { %s2083_s0 = inlined_call_operand.hbm [shape: f32[2,128,128], index: 0, kind: input, shape index: {}]   ;;  %s2084_s1 = inlined_call_operand.hbm [shape: f32[2,128,128], index: 1, kind: input, shape index: {}]   ;;  %s2085_s2 = inlined_call_operand.hbm [shape: f32[128,128], index: 2, kind: input, shape index: {}]   ;;  %s2086_s3 = inlined_call_operand.vmem [shape: f32[1,128], index: 3, kind: input, shape index: {}]   ;;  %s2087_s4 = inlined_call_operand.hbm [shape: f32[128,128], index: 4, kind: input, shape index: {}]   ;;  %s2088_s5 = inlined_call_operand.vmem [shape: f32[1,128], index: 5, kind: input, shape index: {}]   ;;  %s2089_s6 = inlined_call_operand.hbm [shape: f32[2,16,128], index: 6, kind: output, shape index: {0}]   ;;  %s2090_s7 = inlined_call_operand.hbm [shape: f32[2,16,128], index: 7, kind: output, shape index: {1}]  }
   0x1   :  { %2102 = sst [smem:[#allocation23_spill]] %s2083_s0 }
   0x2   :  { %2103 = sst [smem:[#allocation24_spill]] %s2085_s2 }
   0x3   :  { %2104 = sst [smem:[#allocation25_spill]] %s2087_s4 }
   0x4   :  { %13 = vsyncpa [#allocation3], 0 }
   0x5   :  { %15 = vsyncpa [#allocation3 + $0x1], 0 }
   0x6   :  { %16 = vsyncpa [#allocation6], 0 }
   0x7   :  { %18 = vsyncpa [#allocation6 + $0x1], 0 }
   0x8   :  { %19 = vsyncpa [#allocation9], 0 }
   0x9   :  { %20 = vsyncpa [#allocation4], 0 }
   0xa   :  { %22 = vsyncpa [#allocation4 + $0x1], 0 }
   0xb   :  { %23 = vsyncpa [#allocation12], 0 }
   0xc   :  { %25 = vsyncpa [#allocation12 + $0x1], 0  ;;  %s1696_s24 = smov 0   ;;  %s1698_s25 = smov 0  }
   0xd   :  { %s1700_s26 = smov 0   ;;  %s1702_s27 = smov 0  }
   0xe   :  { %s1704_s28 = smov 0   ;;  %s1706_s29 = smov 0  }
   0xf LB: > { %2105 = sst [smem:[#allocation19_spill]] %s1632_s26  ;;  %s1727_s30 = sadd.s32 4294967295, %s1644_s29   ;;  %s1644_s29 = sphi %s1706_s29, %s31_s29   ;;  %s1640_s28 = sphi %s1704_s28, %s2139_s28   ;;  %s1636_s27 = sphi %s1702_s27, %s2138_s27   ;;  %s1632_s26 = sphi %s1700_s26, %s2137_s26   ;;  %s1628_s25 = sphi %s1698_s25, %s2136_s25   ;;  %s1624_s24 = sphi %s1696_s24, %s2135_s24  }
  0x10   : > { %s979_s8 = sadd.s32 4294967294, %s1644_s29   ;;  %p65_p0 = scmp.ne.s32.totalorder %s1628_s25, %s1624_s24 }
  0x11   : > { %p2091_p1 = scmp.eq.s32.totalorder %s1727_s30, 0  ;;  %p207_p3 = scmp.eq.s32.totalorder %s979_s8, 1 }
  0x12   : > { %p980_p5 = scmp.ge.s32.totalorder %s1644_s29, 1  ;;  %p242_p7 = scmp.lt.s32.totalorder %s1644_s29, 3 }
  0x13   : > { %p1736_p4 = por %p2091_p1, %p65_p0  ;;  %p1741_p6 = por %p207_p3, %p65_p0 }
  0x14   : > { %p1746_p8 = pnand %p980_p5, %p242_p7  ;;  %s1646_s12 = smov [#allocation7]  }
  0x15   : > { %s2106_s9 = scalar_select %p1736_p4, 1, 0 }
  0x16   : > { %s2107_s10 = scalar_select %p1741_p6, 1, 0 }
  0x17   : > { %s254_s13 = sshll.u32 %s1646_s12, 4  ;;  %p1317_p9 = pneg %p1746_p8  ;;  %s1750_s13 = int_to_ptr.vmem [resolvable:$true] %s254_s13 }
  0x18   : > { %2108 = sst [smem:[#allocation20_spill]] %s2107_s10  ;;  %s1647_s15 = smov [#allocation8]  }
  0x19   : > { %p1757_p11 = pnand %p1317_p9, %p2091_p1  ;;  %s270_s16 = sshll.u32 %s1647_s15, 4  ;;  %s1761_s16 = int_to_ptr.vmem [resolvable:$true] %s270_s16 }
  0x1a   : > { %s2111_s2 = sld [smem:[#allocation24_spill]] }
  0x1b   : > { %p1404_p13 = pneg %p1757_p11 }
  0x20   : > { %s1402_s19 = scalar_lea.hbm %s2111_s2, 2048 }
  0x21   : > { %p1403_p12 = scmp.ne.s32.totalorder %s2111_s2, %s1402_s19  ;;  %p1409_p5 = scmp.lt.u32.totalorder %s1402_s19, %s2111_s2 }
  0x23   : > { %p1405_p0 = pnand %p1404_p13, %p1403_p12 }
  0x25   : > { %p1406_p3 = pneg %p1405_p0 }
  0x27   : > { %p1411_p7 = pnand %p1409_p5, %p1406_p3 }
  0x29   : > { %1414 = shalt.err (!%p1411_p7)
}
  0x2a   : > { %s1415_s8 = scalar_lea.vmem %s1750_s13, 2048  ;;  %p1423_p2 = scmp.lt.s32.totalorder %s1750_s13, %s1750_s13 }
  0x2b   : > { %p1416_p9 = scmp.ne.s32.totalorder %s1750_s13, %s1415_s8  ;;  %p1424_p12 = scmp.lt.s32.totalorder %s1415_s8, %s1415_s8 }
  0x2d   : > { %p1418_p10 = pnand %p1416_p9, %p1404_p13  ;;  %p1425_p0 = por %p1424_p12, %p1423_p2 }
  0x2f   : > { %p1419_p1 = pneg %p1418_p10 }
  0x31   : > { %p1426_p6 = pnand %p1425_p0, %p1419_p1 }
  0x33   : > { %1429 = shalt.err (!%p1426_p6)
}
  0x34   : > { %s2093_s12 = smov 128   ;;  %s2095_s15 = smov 8  }
  0x35   : > { %1320 = dma.hbm_to_vmem [thread:$0]  (!%p1757_p11), %s2111_s2, 2048, %s1750_s13, [#allocation6], %s2093_s12, %s2093_s12, %s2095_s15  }
  0x36   : > { %s2112_s4 = sld [smem:[#allocation25_spill]] }
  0x3c   : > { %s1430_s21 = scalar_lea.hbm %s2112_s4, 2048 }
  0x3d   : > { %p1431_p1 = scmp.ne.s32.totalorder %s2112_s4, %s1430_s21  ;;  %p1437_p10 = scmp.lt.u32.totalorder %s1430_s21, %s2112_s4 }
  0x3f   : > { %p1433_p2 = pnand %p1431_p1, %p1404_p13 }
  0x41   : > { %p1434_p6 = pneg %p1433_p2 }
  0x43   : > { %p1439_p3 = pnand %p1437_p10, %p1434_p6 }
  0x45   : > { %1442 = shalt.err (!%p1439_p3)
}
  0x46   : > { %s1443_s13 = scalar_lea.vmem %s1761_s16, 2048  ;;  %p1451_p12 = scmp.lt.s32.totalorder %s1761_s16, %s1761_s16 }
  0x47   : > { %p1444_p5 = scmp.ne.s32.totalorder %s1761_s16, %s1443_s13  ;;  %p1452_p0 = scmp.lt.s32.totalorder %s1443_s13, %s1443_s13 }
  0x49   : > { %p1446_p7 = pnand %p1444_p5, %p1404_p13  ;;  %p1453_p1 = por %p1452_p0, %p1451_p12 }
  0x4b   : > { %p1447_p9 = pneg %p1446_p7 }
  0x4d   : > { %p1454_p2 = pnand %p1453_p1, %p1447_p9 }
  0x4f   : > { %1457 = shalt.err (!%p1454_p2)
}
  0x50   : > { %1323 = dma.hbm_to_vmem [thread:$0]  (!%p1757_p11), %s2112_s4, 2048, %s1761_s16, [#allocation9], %s2093_s12, %s2093_s12, %s2095_s15  }
  0x51   : > { %s43_s14 = sadd.s32 1, %s1640_s28  ;;  %s52_s18 = sadd.s32 1, %s1632_s26 }
  0x52   : > { %p45_p13 = scmp.ge.s32.totalorder %s43_s14, 2  ;;  %p59_p6 = scmp.ne.s32.totalorder %s1632_s26, %s1628_s25 }
  0x53   : > { %p60_p10 = scmp.eq.s32.totalorder %s1644_s29, 0  ;;  %p1340_p3 = scmp.lt.s32.totalorder %s1644_s29, 2 }
  0x54   : > { %s2141_s14 = smov (%p45_p13, %s43_s14), 0  ;;  %p2114_p7 = scmp.eq.s32.totalorder %s1727_s30, 1 }
  0x55   : > { %2113 = sst [smem:[#allocation21_spill]] %s2141_s14  ;;  %p61_p5 = por %p60_p10, %p59_p6 }
  0x56   : > { %p1831_p9 = por %p2114_p7, %p59_p6  ;;  %s47_s20 = ssub.s32 %s1640_s28, %s2141_s14 }
  0x57   : > { %s1838_s16 = sand.u32 1, %s1632_s26   ;;  %p50_p11 = scmp.eq.s32.totalorder %s47_s20, 0 }
  0x58   : > { %s2115_s19 = scalar_select %p1831_p9, 1, 0 }
  0x59   : > { %s984_s21 = sshll.u32 %s1838_s16, 4  ;;  %s2097_s22 = sshll.u32 %s1640_s28, 11 }
  0x5a   : > { %s1843_s23 = scalar_select %p50_p11, %s1632_s26, %s52_s18  }
  0x5b   : > { %s2117_s0 = sld [smem:[#allocation23_spill]]  ;;  %s291_s17 = scalar_lea.vmem [#allocation2], %s984_s21 }
  0x5c   : > { %2116 = sst [smem:[#allocation22_spill]] %s1843_s23  ;;  %s300_s12 = sshll.u32 %s291_s17, 4  ;;  %s1858_s12 = int_to_ptr.vmem [resolvable:$true] %s300_s12 }
  0x5d   : > { %p1854_p12 = pnand %p1340_p3, %p61_p5  ;;  %s288_s20 = scalar_lea.sflag [#allocation3], %s1838_s16 }
  0x5f   : > { %p1460_p1 = pneg %p1854_p12 }
  0x61   : > { %s1850_s10 = scalar_lea.hbm %s2117_s0, %s2097_s22  ;;  %s1463_s17 = scalar_lea.hbm %s2117_s0, 4096 }
  0x62   : > { %s1458_s8 = scalar_lea.hbm %s1850_s10, 256  ;;  %p1464_p6 = scmp.lt.u32.totalorder %s1850_s10, %s2117_s0 }
  0x63   : > { %p1459_p0 = scmp.ne.s32.totalorder %s1850_s10, %s1458_s8  ;;  %p1465_p10 = scmp.lt.u32.totalorder %s1463_s17, %s1458_s8 }
  0x64   : > { %p1467_p5 = scmp.lt.u32.totalorder %s1458_s8, %s1850_s10 }
  0x65   : > { %p1461_p2 = pnand %p1460_p1, %p1459_p0  ;;  %p1466_p3 = por %p1465_p10, %p1464_p6 }
  0x67   : > { %p1462_p13 = pneg %p1461_p2  ;;  %p1468_p7 = por %p1467_p5, %p1466_p3 }
  0x69   : > { %p1469_p11 = pnand %p1468_p7, %p1462_p13 }
  0x6b   : > { %1472 = shalt.err (!%p1469_p11)
}
  0x6c   : > { %s1473_s18 = scalar_lea.vmem %s1858_s12, 256  ;;  %s1650_s21 = smov [#allocation2]  }
  0x6d   : > { %p1474_p0 = scmp.ne.s32.totalorder %s1858_s12, %s1473_s18  ;;  %s1478_s13 = sshll.u32 %s1650_s21, 4  ;;  %s1479_s13 = int_to_ptr.vmem [resolvable:$false] %s1478_s13 }
  0x6e   : > { %s1480_s2 = scalar_lea.vmem %s1479_s13, 512  ;;  %p1481_p4 = scmp.lt.s32.totalorder %s1858_s12, %s1479_s13 }
  0x6f   : > { %p1476_p2 = pnand %p1474_p0, %p1460_p1  ;;  %p1482_p6 = scmp.lt.s32.totalorder %s1480_s2, %s1473_s18 }
  0x71   : > { %p1477_p9 = pneg %p1476_p2  ;;  %p1483_p10 = por %p1482_p6, %p1481_p4 }
  0x73   : > { %p1484_p3 = pnand %p1483_p10, %p1477_p9 }
  0x75   : > { %1487 = shalt.err (!%p1484_p3)
}
  0x76   : > { %s2119_s22 = smov 8   ;;  %s2120_s8 = smov 128  }
  0x77   : > { %1327 = dma.hbm_to_vmem [thread:$0]  (!%p1854_p12), %s1850_s10, 256, %s1858_s12, %s288_s20, %s2120_s8, %s2120_s8, %s2119_s22  }
  0x78   : > { %s2121_s17 = sshll.u32 %s1640_s28, 11  ;;  %s987_s2 = sshll.u32 %s1838_s16, 7 }
  0x79   : > { %s1897_s13 = scalar_lea.hbm %s2084_s1, %s2121_s17  ;;  %s314_s0 = scalar_lea.vmem [#allocation5], %s987_s2 }
  0x7a   : > { %s321_s4 = sshll.u32 %s314_s0, 4  ;;  %s2122_s14 = sand.u32 1, %s1644_s29   ;;  %s1900_s4 = int_to_ptr.vmem [resolvable:$true] %s321_s4 }
  0x7b   : > { %s1904_s23 = scalar_lea.sflag [#allocation6], %s2122_s14  ;;  %s1488_s26 = scalar_lea.hbm %s1897_s13, 2048 }
  0x7c   : > { %p1489_p4 = scmp.ne.s32.totalorder %s1897_s13, %s1488_s26  ;;  %s1493_s20 = scalar_lea.hbm %s2084_s1, 4096 }
  0x7d   : > { %p1494_p5 = scmp.lt.u32.totalorder %s1897_s13, %s2084_s1  ;;  %p1495_p7 = scmp.lt.u32.totalorder %s1493_s20, %s1488_s26 }
  0x7e   : > { %p1491_p9 = pnand %p1489_p4, %p1460_p1  ;;  %p1497_p0 = scmp.lt.u32.totalorder %s1488_s26, %s1897_s13 }
  0x7f   : > { %p1496_p11 = por %p1495_p7, %p1494_p5 }
  0x80   : > { %p1492_p13 = pneg %p1491_p9 }
  0x81   : > { %p1498_p2 = por %p1497_p0, %p1496_p11 }
  0x83   : > { %p1499_p6 = pnand %p1498_p2, %p1492_p13 }
  0x85   : > { %1502 = shalt.err (!%p1499_p6)
}
  0x86   : > { %s1503_s0 = scalar_lea.vmem %s1900_s4, 2048  ;;  %s1651_s14 = smov [#allocation5]  }
  0x87   : > { %p1504_p10 = scmp.ne.s32.totalorder %s1900_s4, %s1503_s0  ;;  %s1508_s16 = sshll.u32 %s1651_s14, 4  ;;  %s1509_s16 = int_to_ptr.vmem [resolvable:$false] %s1508_s16 }
  0x88   : > { %s1510_s18 = scalar_lea.vmem %s1509_s16, 4096  ;;  %p1511_p9 = scmp.lt.s32.totalorder %s1900_s4, %s1509_s16 }
  0x89   : > { %p1506_p3 = pnand %p1504_p10, %p1460_p1  ;;  %p1512_p5 = scmp.lt.s32.totalorder %s1510_s18, %s1503_s0 }
  0x8b   : > { %p1507_p4 = pneg %p1506_p3  ;;  %p1513_p7 = por %p1512_p5, %p1511_p9 }
  0x8d   : > { %p1514_p11 = pnand %p1513_p7, %p1507_p4 }
  0x8f   : > { %1517 = shalt.err (!%p1514_p11)
}
  0x90   : > { %1330 = dma.hbm_to_vmem [thread:$0]  (!%p1854_p12), %s1897_s13, 2048, %s1900_s4, %s1904_s23, %s2120_s8, %s2120_s8, %s2119_s22  }
  0x91   : > { %333 = sbr.rel (%p1746_p8) target bundleno = 776 (0x308), region = 44  ;;  %s1936_s26 = sand.u32 (!%p1746_p8), 1, %s1628_s25  }
  0x92   : > { %s1939_s2 = sshll.u32 (!%p1746_p8), %s1936_s26, 4  ;;  %s336_s15 = scalar_lea.sflag (!%p1746_p8), [#allocation3], %s1936_s26 }
  0x93   : > { %s339_s12 = scalar_lea.vmem (!%p1746_p8), [#allocation2], %s1939_s2  ;;  %p2123_p1 = scmp.ne.s32.totalorder (!%p1746_p8), %s2106_s9, 0 }
  0x98   : > { %1599 = dma.done.wait (%p2123_p1), %s336_s15, 256  }
  0x99   : > { %1601 = vsyncadd (%p2123_p1), %s336_s15, 4294967040  ;;  %s344_s4 = sand.u32 1, %s1727_s30   ;;  %s992_s11 = sshll.u32 %s1936_s26, 7 }
  0x9a   : > { %s345_s23 = scalar_lea.sflag [#allocation6], %s344_s4  ;;  %s1949_s22 = scalar_lea.vmem [#allocation5], %s992_s11 }
  0x9b   : > { %1603 = dma.done.wait (%p2123_p1), %s345_s23, 2048  }
  0x9c   : > { %1605 = vsyncadd (%p2123_p1), %s345_s23, 4294965248  ;;  %p2124_p8 = scmp.eq.s32.totalorder %s1727_s30, 0 }
  0x9e   : > { %1607 = dma.done.wait (%p2124_p8), [#allocation6], 2048   ;;  %p2125_p12 = pmov %p2124_p8 }
  0x9f   : > { %p2126_p13 = pmov %p2124_p8 }
  0xa0   : > { %1609 = vsyncadd (%p2125_p12), [#allocation6], 4294965248 }
  0xa1   : > { %1611 = dma.done.wait (%p2126_p13), [#allocation9], 2048   ;;  %p2127_p0 = pmov %p2124_p8 }
  0xa2   : > { %v418_v0 = vld [vmem:[#allocation7] sm:$0xff]  ;;  %v419_v1 = vld [vmem:[#allocation7 + $0x8] sm:$0xff]  ;;  %v420_v2 = vld [vmem:[#allocation7 + $0x10] sm:$0xff]  ;;  %s1009_s10 = sshll.u32 %s1636_s27, 8  ;;  %s389_s20 = scalar_lea.vmem [#allocation10], %s1939_s2 }
  0xa3   : > { %1613 = vsyncadd (%p2127_p0), [#allocation9], 4294965248  ;;  %v1205_v3 = vpack.c.bf16 %v419_v1, %v418_v0  ;;  %v421_v4 = vld [vmem:[#allocation7 + $0x18] sm:$0xff]  ;;  %v422_v6 = vld [vmem:[#allocation7 + $0x20] sm:$0xff]  ;;  %s796_s17 = sshll.u32 %s389_s20, 4  ;;  %s1994_s14 = scalar_lea.hbm %s2089_s6, %s1009_s10  ;;  %s1997_s17 = int_to_ptr.vmem [resolvable:$true] %s796_s17 }
  0xa4   : > { %v1209_v5 = vpack.c.bf16 %v421_v4, %v420_v2  ;;  %v423_v7 = vld [vmem:[#allocation7 + $0x28] sm:$0xff]  ;;  %v400_v9 = vld [vmem:[%s339_s12] sm:$0xff]  ;;  %v425_v11 = vld [vmem:[#allocation7 + $0x38] sm:$0xff]  ;;  %s396_s16 = scalar_lea.vmem [#allocation11], %s1939_s2  ;;  %s2002_s15 = scalar_lea.hbm %s2090_s7, %s1009_s10 }
  0xa5   : > { %1206 = vmatprep.subr.bf16.mxu1 %v1205_v3  ;;  %v1213_v8 = vpack.c.bf16 %v423_v7, %v422_v6  ;;  %v424_v10 = vld [vmem:[#allocation7 + $0x30] sm:$0xff]  ;;  %1111 = vmatprep.mubr.f32.mxu1 %v400_v9  ;;  %v426_v13 = vld [vmem:[#allocation7 + $0x40] sm:$0xff]  ;;  %v427_v14 = vld [vmem:[#allocation7 + $0x48] sm:$0xff]  ;;  %s814_s18 = sshll.u32 %s396_s16, 4  ;;  %s1518_s4 = scalar_lea.vmem %s1997_s17, 256  ;;  %s2004_s18 = int_to_ptr.vmem [resolvable:$true] %s814_s18 }
  0xa6   : > { %1208 = vmatpush3.bf16.msra.mxu1 %v1205_v3  ;;  %v1217_v12 = vpack.c.bf16 %v425_v11, %v424_v10  ;;  %v1221_v15 = vpack.c.bf16 %v427_v14, %v426_v13  ;;  %v428_v16 = vld [vmem:[#allocation7 + $0x50] sm:$0xff]  ;;  %v429_v17 = vld [vmem:[#allocation7 + $0x58] sm:$0xff]  ;;  %v430_v19 = vld [vmem:[#allocation7 + $0x60] sm:$0xff]  ;;  %p1519_p2 = scmp.ne.s32.totalorder %s1997_s17, %s1518_s4  ;;  %p2128_p6 = scmp.ne.s32.totalorder %s2115_s19, 0 }
  0xa7   : > { %1210 = vmatprep.subr.bf16.mxu1 %v1209_v5  ;;  %v1225_v18 = vpack.c.bf16 %v429_v17, %v428_v16  ;;  %v431_v20 = vld [vmem:[#allocation7 + $0x68] sm:$0xff]  ;;  %v432_v22 = vld [vmem:[#allocation7 + $0x70] sm:$0xff]  ;;  %v433_v23 = vld [vmem:[#allocation7 + $0x78] sm:$0xff]  ;;  %s1652_s11 = smov [#allocation10]  }
  0xa8   : > { %v1229_v21 = vpack.c.bf16 %v431_v20, %v430_v19  ;;  %v1233_v24 = vpack.c.bf16 %v433_v23, %v432_v22  ;;  %v516_v25 = vld [vmem:[#allocation8] sm:$0xff]  ;;  %v517_v26 = vld [vmem:[#allocation8 + $0x8] sm:$0xff]  ;;  %v518_v28 = vld [vmem:[#allocation8 + $0x10] sm:$0xff]  ;;  %p1520_p10 = pnand %p1519_p2, %p2128_p6  ;;  %s1522_s23 = sshll.u32 %s1652_s11, 4  ;;  %s1523_s23 = int_to_ptr.vmem [resolvable:$false] %s1522_s23 }
  0xa9   : > { %v1237_v27 = vpack.c.bf16 %v517_v26, %v516_v25  ;;  %v519_v29 = vld [vmem:[#allocation8 + $0x18] sm:$0xff]  ;;  %v402_v32 = vld [vmem:[%s1949_s22] sm:$0xff]  ;;  %v521_v34 = vld [vmem:[#allocation8 + $0x28] sm:$0xff]  ;;  %p1525_p4 = scmp.lt.s32.totalorder %s1997_s17, %s1523_s23 }
  0xaa   : > { %1212 = vmatpush3.bf16.msra.mxu1 %v1209_v5  ;;  %v401_v30 = vld [vmem:[%s339_s12 + $0x8] sm:$0xff]  ;;  %v1241_v31 = vpack.c.bf16 %v519_v29, %v518_v28  ;;  %v520_v33 = vld [vmem:[#allocation8 + $0x20] sm:$0xff]  ;;  %v522_v36 = vld [vmem:[#allocation8 + $0x30] sm:$0xff]  ;;  %s776_s12 = scalar_lea.sflag [#allocation4], %s1936_s26  ;;  %p1521_p3 = pneg %p1520_p10 }
  0xab   : > { %1214 = vmatprep.subr.bf16.mxu1 %v1213_v8  ;;  %v1245_v35 = vpack.c.bf16 %v521_v34, %v520_v33  ;;  %v523_v37 = vld [vmem:[#allocation8 + $0x38] sm:$0xff]  ;;  %v524_v39 = vld [vmem:[#allocation8 + $0x40] sm:$0xff]  ;;  %v525_v40 = vld [vmem:[#allocation8 + $0x48] sm:$0xff] }
  0xac   : > { %v1249_v38 = vpack.c.bf16 %v523_v37, %v522_v36  ;;  %v1253_v41 = vpack.c.bf16 %v525_v40, %v524_v39  ;;  %v526_v42 = vld [vmem:[#allocation8 + $0x50] sm:$0xff]  ;;  %v527_v43 = vld [vmem:[#allocation8 + $0x58] sm:$0xff]  ;;  %v528_v45 = vld [vmem:[#allocation8 + $0x60] sm:$0xff] }
  0xad   : > { %v1257_v44 = vpack.c.bf16 %v527_v43, %v526_v42  ;;  %v529_v46 = vld [vmem:[#allocation8 + $0x68] sm:$0xff]  ;;  %v530_v48 = vld [vmem:[#allocation8 + $0x70] sm:$0xff]  ;;  %v531_v49 = vld [vmem:[#allocation8 + $0x78] sm:$0xff] }
  0xae   : > { %1216 = vmatpush3.bf16.msra.mxu1 %v1213_v8  ;;  %v1261_v47 = vpack.c.bf16 %v529_v46, %v528_v45  ;;  %v1265_v50 = vpack.c.bf16 %v531_v49, %v530_v48  ;;  %v403_v51 = vld [vmem:[%s1949_s22 + $0x8] sm:$0xff]  ;;  %v404_v52 = vld [vmem:[%s1949_s22 + $0x10] sm:$0xff]  ;;  %v405_v53 = vld [vmem:[%s1949_s22 + $0x18] sm:$0xff] }
  0xaf   : > { %1218 = vmatprep.subr.bf16.mxu1 %v1217_v12  ;;  %v406_v54 = vld [vmem:[%s1949_s22 + $0x20] sm:$0xff]  ;;  %v407_v55 = vld [vmem:[%s1949_s22 + $0x28] sm:$0xff]  ;;  %v408_v56 = vld [vmem:[%s1949_s22 + $0x30] sm:$0xff] }
  0xb0   : > { %v409_v57 = vld [vmem:[%s1949_s22 + $0x38] sm:$0xff]  ;;  %v410_v58 = vld [vmem:[%s1949_s22 + $0x40] sm:$0xff]  ;;  %v411_v59 = vld [vmem:[%s1949_s22 + $0x48] sm:$0xff] }
  0xb1   : > { %v412_v60 = vld [vmem:[%s1949_s22 + $0x50] sm:$0xff]  ;;  %v413_v61 = vld [vmem:[%s1949_s22 + $0x58] sm:$0xff]  ;;  %v414_v62 = vld [vmem:[%s1949_s22 + $0x60] sm:$0xff] }
  0xb2   : > { %1220 = vmatpush3.bf16.msra.mxu1 %v1217_v12  ;;  %v415_v63 = vld [vmem:[%s1949_s22 + $0x68] sm:$0xff]  ;;  %v416_v0 = vld [vmem:[%s1949_s22 + $0x70] sm:$0xff]  ;;  %v417_v1 = vld [vmem:[%s1949_s22 + $0x78] sm:$0xff]  ;;  %s1524_s22 = scalar_lea.vmem %s1523_s23, 512 }
  0xb3   : > { %1222 = vmatprep.subr.bf16.mxu1 %v1221_v15  ;;  %v997_v2 = vld [vmem:[%s2086_s3] ss:$0 sm:$0xff]  ;;  %p1526_p9 = scmp.lt.s32.totalorder %s1524_s22, %s1518_s4 }
  0xb4   : > { %v998_v7 = vld [vmem:[%s2088_s5] ss:$0 sm:$0xff] }
  0xb5   : > { %p1527_p5 = por %p1526_p9, %p1525_p4 }
  0xb6   : > { %1224 = vmatpush3.bf16.msra.mxu1 %v1221_v15 }
  0xb7   : > { %1226 = vmatprep.subr.bf16.mxu1 %v1225_v18  ;;  %p1528_p7 = pnand %p1527_p5, %p1521_p3 }
  0xba   : > { %1228 = vmatpush3.bf16.msra.mxu1 %v1225_v18 }
  0xbb   : > { %1230 = vmatprep.subr.bf16.mxu1 %v1229_v21 }
  0xbe   : > { %1232 = vmatpush3.bf16.msra.mxu1 %v1229_v21 }
  0xbf   : > { %1234 = vmatprep.subr.bf16.mxu1 %v1233_v24 }
  0xc2   : > { %1236 = vmatpush3.bf16.msra.mxu1 %v1233_v24 }
  0xc3   : > { %1238 = vmatprep.subr.bf16.mxu1 %v1237_v27 }
  0xc5   : > { %1112 = vmatmul.mubr.f32.vlgmr.msra.gmra.mrb[0].mxu1 %v401_v30 }
  0xc6   : > { %1240 = vmatpush3.bf16.msra.mxu1 %v1237_v27  ;;  %1146 = vmatprep.mubr.f32.mxu1 %v402_v32 }
  0xc7   : > { %1242 = vmatprep.subr.bf16.mxu1 %v1241_v31 }
  0xca   : > { %1244 = vmatpush3.bf16.msra.mxu1 %v1241_v31 }
  0xcb   : > { %1246 = vmatprep.subr.bf16.mxu1 %v1245_v35 }
  0xce   : > { %1248 = vmatpush3.bf16.msra.mxu1 %v1245_v35 }
  0xcf   : > { %1250 = vmatprep.subr.bf16.mxu1 %v1249_v38 }
  0xd2   : > { %1252 = vmatpush3.bf16.msra.mxu1 %v1249_v38 }
  0xd3   : > { %1254 = vmatprep.subr.bf16.mxu1 %v1253_v41 }
  0xd6   : > { %1256 = vmatpush3.bf16.msra.mxu1 %v1253_v41 }
  0xd7   : > { %1258 = vmatprep.subr.bf16.mxu1 %v1257_v44 }
  0xda   : > { %1260 = vmatpush3.bf16.msra.mxu1 %v1257_v44 }
  0xdb   : > { %1262 = vmatprep.subr.bf16.mxu1 %v1261_v47 }
  0xde   : > { %1264 = vmatpush3.bf16.msra.mxu1 %v1261_v47 }
  0xdf   : > { %1266 = vmatprep.subr.bf16.mxu1 %v1265_v50 }
  0xe2   : > { %1268 = vmatpush3.bf16.msra.mxu1 %v1265_v50 }
  0xe5   : > { %1147 = vmatmul.mubr.f32.vlgmr.msra.gmra.mrb[2].mxu1 %v403_v51 }
  0xe6   : > { %1149 = vmatprep.mubr.f32.mxu1 %v404_v52 }
  0xe9   : > { %1150 = vmatmul.mubr.f32.gmra.mrb[4].mxu1 %v405_v53 }
  0xea   : > { %1152 = vmatprep.mubr.f32.mxu1 %v406_v54 }
  0xed   : > { %1153 = vmatmul.mubr.f32.gmra.mrb[6].mxu1 %v407_v55 }
  0xee   : > { %1155 = vmatprep.mubr.f32.mxu1 %v408_v56 }
  0xf1   : > { %1156 = vmatmul.mubr.f32.gmra.mrb[8].mxu1 %v409_v57 }
  0xf2   : > { %1158 = vmatprep.mubr.f32.mxu1 %v410_v58 }
  0xf5   : > { %1159 = vmatmul.mubr.f32.gmra.mrb[10].mxu1 %v411_v59 }
  0xf6   : > { %1161 = vmatprep.mubr.f32.mxu1 %v412_v60 }
  0xf9   : > { %1162 = vmatmul.mubr.f32.gmra.mrb[12].mxu1 %v413_v61 }
  0xfa   : > { %1164 = vmatprep.mubr.f32.mxu1 %v414_v62 }
  0xfd   : > { %1165 = vmatmul.mubr.f32.gmra.mrb[14].mxu1 %v415_v63 }
  0xfe   : > { %1167 = vmatprep.mubr.f32.mxu1 %v416_v0 }
 0x101   : > { %1168 = vmatmul.mubr.f32.gmra.mrb[16].mxu1 %v417_v1 }
 0x198   : > { %v1113_v3 = vpop.f32.mrb[0].mxu1 }
 0x199   : > { %v513_v4 = vadd.f32 %v1113_v3, %v997_v2  ;;  %v507_v5 = vpop.f32.mrb[1].mxu1 }
 0x19a   : > { %v508_v6 = vadd.f32 %v997_v2, %v507_v5 }
 0x19c   : > { %1202 = vmatprep.mubr.f32.mxu0 %v508_v6 }
 0x1b8   : > { %v1148_v8 = vpop.f32.mrb[2].mxu1 }
 0x1b9   : > { %v611_v9 = vadd.f32 %v1148_v8, %v998_v7  ;;  %v605_v10 = vpop.f32.mrb[3].mxu1 }
 0x1ba   : > { %v606_v11 = vadd.f32 %v998_v7, %v605_v10 }
 0x1bc   : > { %v1269_v12 = vpack.c.bf16 %v611_v9, %v606_v11  ;;  %v1151_v13 = vpop.f32.mrb[4].mxu1 }
 0x1bd   : > { %v621_v14 = vadd.f32 %v1151_v13, %v998_v7  ;;  %v615_v15 = vpop.f32.mrb[5].mxu1 }
 0x1be   : > { %1270 = vmatprep.subr.bf16.mxu0 %v1269_v12  ;;  %v616_v16 = vadd.f32 %v998_v7, %v615_v15 }
 0x1bf   : > { %1272 = vmatpush3.bf16.xpose.msra.mxu0 %v1269_v12 }
 0x1c0   : > { %v1273_v17 = vpack.c.bf16 %v621_v14, %v616_v16  ;;  %v1154_v18 = vpop.f32.mrb[6].mxu1 }
 0x1c1   : > { %v631_v19 = vadd.f32 %v1154_v18, %v998_v7  ;;  %v625_v20 = vpop.f32.mrb[7].mxu1 }
 0x1c2   : > { %1274 = vmatprep.subr.bf16.mxu0 %v1273_v17  ;;  %v626_v21 = vadd.f32 %v998_v7, %v625_v20 }
 0x1c4   : > { %v1277_v22 = vpack.c.bf16 %v631_v19, %v626_v21  ;;  %v1157_v23 = vpop.f32.mrb[8].mxu1 }
 0x1c5   : > { %v641_v24 = vadd.f32 %v1157_v23, %v998_v7  ;;  %v635_v25 = vpop.f32.mrb[9].mxu1 }
 0x1c6   : > { %v636_v26 = vadd.f32 %v998_v7, %v635_v25 }
 0x1c7   : > { %1276 = vmatpush3.bf16.xpose.msra.mxu0 %v1273_v17 }
 0x1c8   : > { %1278 = vmatprep.subr.bf16.mxu0 %v1277_v22  ;;  %v1281_v27 = vpack.c.bf16 %v641_v24, %v636_v26  ;;  %v1160_v28 = vpop.f32.mrb[10].mxu1 }
 0x1c9   : > { %v651_v29 = vadd.f32 %v1160_v28, %v998_v7  ;;  %v645_v30 = vpop.f32.mrb[11].mxu1 }
 0x1ca   : > { %v646_v31 = vadd.f32 %v998_v7, %v645_v30 }
 0x1cc   : > { %v1285_v32 = vpack.c.bf16 %v651_v29, %v646_v31  ;;  %v1163_v33 = vpop.f32.mrb[12].mxu1 }
 0x1cd   : > { %v661_v34 = vadd.f32 %v1163_v33, %v998_v7  ;;  %v655_v35 = vpop.f32.mrb[13].mxu1 }
 0x1ce   : > { %v656_v36 = vadd.f32 %v998_v7, %v655_v35 }
 0x1cf   : > { %1280 = vmatpush3.bf16.xpose.msra.mxu0 %v1277_v22 }
 0x1d0   : > { %1282 = vmatprep.subr.bf16.mxu0 %v1281_v27  ;;  %v1289_v37 = vpack.c.bf16 %v661_v34, %v656_v36  ;;  %v1166_v38 = vpop.f32.mrb[14].mxu1 }
 0x1d1   : > { %v671_v39 = vadd.f32 %v1166_v38, %v998_v7  ;;  %v665_v40 = vpop.f32.mrb[15].mxu1 }
 0x1d2   : > { %v666_v41 = vadd.f32 %v998_v7, %v665_v40 }
 0x1d4   : > { %v1293_v42 = vpack.c.bf16 %v671_v39, %v666_v41  ;;  %v1169_v43 = vpop.f32.mrb[16].mxu1 }
 0x1d5   : > { %v681_v44 = vadd.f32 %v1169_v43, %v998_v7  ;;  %v675_v45 = vpop.f32.mrb[17].mxu1 }
 0x1d6   : > { %v676_v46 = vadd.f32 %v998_v7, %v675_v45 }
 0x1d7   : > { %1284 = vmatpush3.bf16.xpose.msra.mxu0 %v1281_v27 }
 0x1d8   : > { %1286 = vmatprep.subr.bf16.mxu0 %v1285_v32  ;;  %v1297_v47 = vpack.c.bf16 %v681_v44, %v676_v46 }
 0x1df   : > { %1288 = vmatpush3.bf16.xpose.msra.mxu0 %v1285_v32 }
 0x1e0   : > { %1290 = vmatprep.subr.bf16.mxu0 %v1289_v37 }
 0x1e7   : > { %1292 = vmatpush3.bf16.xpose.msra.mxu0 %v1289_v37 }
 0x1e8   : > { %1294 = vmatprep.subr.bf16.mxu0 %v1293_v42 }
 0x1ef   : > { %1296 = vmatpush3.bf16.xpose.msra.mxu0 %v1293_v42 }
 0x1f0   : > { %1298 = vmatprep.subr.bf16.mxu0 %v1297_v47 }
 0x1f7   : > { %1300 = vmatpush3.bf16.xpose.msra.mxu0 %v1297_v47 }
 0x1fe   : > { %1203 = vmatmul.mubr.f32.vlgmr.msra.gmra.mrb[0].mxu0 %v513_v4 }
 0x2d1   : > { %v1204_v48 = vpop.f32.mrb[0].mxu0 }
 0x2d2   : > { %v760_v49 = vmul.f32 0.17677669, %v1204_v48  ;;  %v750_v50 = vpop.f32.mrb[1].mxu0 }
 0x2d3   : > { %v759_v51 = vmul.f32 0.17677669, %v750_v50 }
 0x2d4   : > { %1398 = vtanh.f32 %v760_v49 }
 0x2d5   : > { %1400 = vtanh.f32 %v759_v51 }
 0x2de   : > { %v1399_v52 = vpop.eup %1398 }
 0x2df   : > { %v1401_v53 = vpop.eup %1400  ;;  %vm764_vm0 = vcmp.gt.f32.partialorder %v1399_v52, 0.0  ;;  %vm770_vm1 = vcmp.lt.f32.partialorder %v1399_v52, 0.0 }
 0x2e0   : > { %vm763_vm2 = vcmp.gt.f32.partialorder %v1401_v53, 0.0  ;;  %v766_v54 = vsel %vm764_vm0, %v1399_v52, 0.0  ;;  %vm769_vm3 = vcmp.lt.f32.partialorder %v1401_v53, 0.0  ;;  %v772_v55 = vsel %vm770_vm1, %v1399_v52, 0.0 }
 0x2e1   : > { %v765_v56 = vsel %vm763_vm2, %v1401_v53, 0.0  ;;  %768 = vst [vmem:[%s389_s20 + $0x8] sm:$0xff] %v766_v54  ;;  %v771_v57 = vsel %vm769_vm3, %v1401_v53, 0.0  ;;  %774 = vst [vmem:[%s396_s16 + $0x8] sm:$0xff] %v772_v55 }
 0x2e2   : > { %767 = vst [vmem:[%s389_s20] sm:$0xff] %v765_v56  ;;  %773 = vst [vmem:[%s396_s16] sm:$0xff] %v771_v57 }
 0x2e3   : > { %1531 = shalt.err (!%p1528_p7)
}
 0x2e4   : > { %s1532_s30 = scalar_lea.hbm %s1994_s14, 256  ;;  %s1536_s13 = scalar_lea.hbm %s2089_s6, 512 }
 0x2e5   : > { %p1533_p11 = scmp.ne.s32.totalorder %s1994_s14, %s1532_s30  ;;  %p1537_p12 = scmp.lt.u32.totalorder %s1994_s14, %s2089_s6 }
 0x2e6   : > { %p1538_p13 = scmp.lt.u32.totalorder %s1536_s13, %s1532_s30  ;;  %p1540_p2 = scmp.lt.u32.totalorder %s1532_s30, %s1994_s14 }
 0x2e7   : > { %p1534_p1 = pnand %p1533_p11, %p2128_p6 }
 0x2e8   : > { %p1539_p0 = por %p1538_p13, %p1537_p12 }
 0x2e9   : > { %p1535_p8 = pneg %p1534_p1 }
 0x2ea   : > { %p1541_p10 = por %p1540_p2, %p1539_p0 }
 0x2ec   : > { %p1542_p3 = pnand %p1541_p10, %p1535_p8 }
 0x2ee   : > { %1545 = shalt.err (!%p1542_p3)
}
 0x2ef   : > { %s1653_s21 = smov 128   ;;  %s1654_s0 = smov 8  }
 0x2f0   : > { %1313 = dma.vmem_to_hbm [thread:$0]  (%p2128_p6), %s1997_s17, 256, %s1994_s14, %s776_s12, %s1653_s21, %s1653_s21, %s1654_s0  }
 0x2f1   : > { %s781_s16 = scalar_lea.sflag [#allocation12], %s1936_s26  ;;  %s1546_s27 = scalar_lea.vmem %s2004_s18, 256 }
 0x2f2   : > { %p1547_p4 = scmp.ne.s32.totalorder %s2004_s18, %s1546_s27  ;;  %s1655_s2 = smov [#allocation11]  }
 0x2f3   : > { %s1550_s4 = sshll.u32 %s1655_s2, 4  ;;  %s1551_s4 = int_to_ptr.vmem [resolvable:$false] %s1550_s4 }
 0x2f4   : > { %p1548_p9 = pnand %p1547_p4, %p2128_p6  ;;  %s1552_s11 = scalar_lea.vmem %s1551_s4, 512 }
 0x2f5   : > { %p1553_p7 = scmp.lt.s32.totalorder %s2004_s18, %s1551_s4  ;;  %p1554_p11 = scmp.lt.s32.totalorder %s1552_s11, %s1546_s27 }
 0x2f6   : > { %p1549_p5 = pneg %p1548_p9 }
 0x2f7   : > { %p1555_p1 = por %p1554_p11, %p1553_p7 }
 0x2f9   : > { %p1556_p8 = pnand %p1555_p1, %p1549_p5 }
 0x2fb   : > { %1559 = shalt.err (!%p1556_p8)
}
 0x2fc   : > { %s1560_s17 = scalar_lea.hbm %s2002_s15, 256  ;;  %s1564_s23 = scalar_lea.hbm %s2090_s7, 512 }
 0x2fd   : > { %p1561_p12 = scmp.ne.s32.totalorder %s2002_s15, %s1560_s17  ;;  %p1565_p2 = scmp.lt.u32.totalorder %s2002_s15, %s2090_s7 }
 0x2fe   : > { %p1566_p10 = scmp.lt.u32.totalorder %s1564_s23, %s1560_s17  ;;  %p1568_p4 = scmp.lt.u32.totalorder %s1560_s17, %s2002_s15 }
 0x2ff   : > { %p1562_p13 = pnand %p1561_p12, %p2128_p6 }
 0x300   : > { %p1567_p3 = por %p1566_p10, %p1565_p2 }
 0x301   : > { %p1563_p0 = pneg %p1562_p13 }
 0x302   : > { %p1569_p9 = por %p1568_p4, %p1567_p3 }
 0x304   : > { %p1570_p5 = pnand %p1569_p9, %p1563_p0 }
 0x306   : > { %1573 = shalt.err (!%p1570_p5)
}
 0x307   : > { %1314 = dma.vmem_to_hbm [thread:$0]  (%p2128_p6), %s2004_s18, 256, %s2002_s15, %s781_s16, %s1653_s21, %s1653_s21, %s1654_s0  }
 0x308 PF: > { %s2129_s9 = sld [smem:[#allocation20_spill]]  ;;  %s829_s8 = sand.u32 1, %s1624_s24  }
 0x309   : > { %p2131_p11 = scmp.ge.s32.totalorder %s1644_s29, 2  ;;  %s830_s13 = scalar_lea.sflag [#allocation4], %s829_s8 }
 0x30e   : > { %p2130_p7 = scmp.ne.s32.totalorder %s2129_s9, 0 }
 0x310   : > { %p1332_p1 = pnand %p2131_p11, %p2130_p7 }
 0x312   : > { %1615 = dma.done.wait (!%p1332_p1), %s830_s13, 256  }
 0x313   : > { %1617 = vsyncadd (!%p1332_p1), %s830_s13, 4294967040  ;;  %s839_s19 = scalar_lea.sflag [#allocation12], %s829_s8 }
 0x314   : > { %1619 = dma.done.wait (!%p1332_p1), %s839_s19, 256  }
 0x315   : > { %1621 = vsyncadd (!%p1332_p1), %s839_s19, 4294967040  ;;  %s31_s29 = sadd.s32 1, %s1644_s29   ;;  %s2132_s26 = sld [smem:[#allocation19_spill]] }
 0x316   : > { %p28_p8 = scmp.ge.s32.totalorder %s31_s29, 4   ;;  %s2133_s18 = sld [smem:[#allocation22_spill]] }
 0x317   : > { %s2134_s15 = sld [smem:[#allocation21_spill]]  ;;  %s2135_s24 = smov %s1628_s25 }
 0x318   : > { %s2138_s27 = smov %s1640_s28  ;;  %30 = sbr.rel (!%p28_p8) target bundleno = 15 (0xf), region = 127 }
 0x31b   : > { %s2136_s25 = smov %s2132_s26 }
 0x31c   : > { %s2137_s26 = smov %s2133_s18 }
 0x31d   : > { %s2139_s28 = smov %s2134_s15 }
 0x31f   :  { %844 = vsyncpa [#allocation3], 1 }
 0x320   :  { %846 = vsyncpa [#allocation3 + $0x1], 1 }
 0x321   :  { %847 = vsyncpa [#allocation6], 1 }
 0x322   :  { %849 = vsyncpa [#allocation6 + $0x1], 1 }
 0x323   :  { %850 = vsyncpa [#allocation9], 1 }
 0x324   :  { %851 = vsyncpa [#allocation4], 1 }
 0x325   :  { %853 = vsyncpa [#allocation4 + $0x1], 1 }
 0x326   :  { %854 = vsyncpa [#allocation12], 1 }
 0x327   :  { %856 = vsyncpa [#allocation12 + $0x1], 1 }

</bundles_post_ra>
